<compile_context>
chip_gen: v7x
topology: tpu7x:2x2x1
jax: 0.10.0
libtpu: 0.0.40
codegen_flags: <defaults>
</compile_context>

<pallas_src>
import numpy as np
import jax
import jax.numpy as jnp
from jax import lax
from jax.experimental import pallas as pl
from jax.experimental.pallas import tpu as pltpu

_EPS = 1e-6  # CosineSimilarity eps


def _reid_loss_kernel(a_ref, p_ref, n_ref, m_ref, out_ref, acc_ref):
    """One (TILE_K, D) tile of triplets per grid step.

    a/p/n_ref: gathered anchor / positive / negative embedding rows (TILE_K, D) f32
    m_ref:     (TILE_K, 2) f32 validity masks [has_positive, has_negative]
    out_ref:   (1, 1) f32 un-normalized sum of all triplet contributions
    acc_ref:   (TILE_K, 1) f32 vector accumulator, resident across the grid
    """
    i = pl.program_id(0)

    @pl.when(i == 0)
    def _():
        acc_ref[...] = jnp.zeros_like(acc_ref)

    a = a_ref[...]
    p = p_ref[...]
    n = n_ref[...]
    m = m_ref[...]

    # Row-wise squared norms / dots over the whole tile (VPU mul + XLU lane reduce).
    saa = jnp.sum(a * a, axis=-1, keepdims=True)
    spp = jnp.sum(p * p, axis=-1, keepdims=True)
    snn = jnp.sum(n * n, axis=-1, keepdims=True)
    sap = jnp.sum(a * p, axis=-1, keepdims=True)
    san = jnp.sum(a * n, axis=-1, keepdims=True)

    eps2 = jnp.float32(_EPS * _EPS)
    # cos = dot / max(||a||*||b||, eps)  ==  dot * rsqrt(max(|a|^2*|b|^2, eps^2))
    cos_p = sap * lax.rsqrt(jnp.maximum(saa * spp, eps2))
    cos_n = san * lax.rsqrt(jnp.maximum(saa * snn, eps2))

    # p_distance = clamp((1 - cos) - 0, min=0); n_distance = clamp(2 - (1 - cos), min=0)
    p_dist = jnp.maximum(1.0 - cos_p, 0.0)
    n_dist = jnp.maximum(2.0 - (1.0 - cos_n), 0.0)

    # Masked arithmetic instead of branches; padded triplets have zero masks.
    acc_ref[...] += p_dist * m[:, 0:1] + n_dist * m[:, 1:2]

    @pl.when(i == pl.num_programs(0) - 1)
    def _():
        out_ref[...] = jnp.sum(acc_ref[...], keepdims=True)


def _round_up(x, m):
    return ((x + m - 1) // m) * m


def build_triplet_indices(ids_x):
    """Host-side index prep over integer labels only -- no embedding data touched."""
    ids_x = np.asarray(ids_x)
    uniq = [int(u) for u in np.unique(ids_x) if int(u) != -1]
    K = len(uniq)
    if K == 0:
        return None
    a_idx = np.zeros((K,), np.int32)
    p_idx = np.zeros((K,), np.int32)
    n_idx = np.zeros((K,), np.int32)
    msk = np.zeros((K, 2), np.float32)
    for i, u in enumerate(uniq):
        loc = np.where(ids_x == u)[0]
        anchor = int(loc[0])
        a_idx[i] = anchor
        if len(loc) >= 2:                       # >=2 same-id occurrences
            p_idx[i] = int(loc[1])
            msk[i, 0] = 1.0
        else:
            p_idx[i] = anchor                   # masked out; just a valid row
        others = [v for v in uniq if v != u]
        if others:                              # a different unique id exists
            n_idx[i] = int(np.where(ids_x == others[0])[0][0])
            msk[i, 1] = 1.0
        else:
            n_idx[i] = anchor                   # masked out
    return a_idx, p_idx, n_idx, msk


def reid_loss_pallas(ids_x, embeddings, T=None, P=None):
    """Forward pass of ReIDLoss (cosine branch). T and P are unused, as in the module."""
    del T, P
    emb = jnp.asarray(embeddings, jnp.float32)
    built = build_triplet_indices(np.asarray(ids_x))
    if built is None:
        # TODO(synk): torch would compute 0/0 (NaN) when no valid ids exist; return 0.0.
        return jnp.float32(0.0)
    a_idx, p_idx, n_idx, msk = built
    K = int(a_idx.shape[0])
    D = int(emb.shape[1])

    # Tile over triplets; keep the double-buffered tile footprint well under the
    # smallest scoped-VMEM default (16 MiB on v5e), portable to v6e/v7x too.
    budget = 6 * 1024 * 1024
    per_row = 3 * 2 * D * 4                     # a, p, n double-buffered f32
    tile_k = max(8, min(512, (budget // max(per_row, 1)) // 8 * 8))
    tile_k = min(tile_k, _round_up(K, 8))
    k_pad = _round_up(K, tile_k)

    # Pad index tables; padded rows gather row 0 but carry zero masks.
    pad = k_pad - K
    a_idx = np.pad(a_idx, (0, pad))
    p_idx = np.pad(p_idx, (0, pad))
    n_idx = np.pad(n_idx, (0, pad))
    msk = np.pad(msk, ((0, pad), (0, 0)))

    # Contiguous wrapper-side gather -> (k_pad, D) each; kernel sees large tiles.
    a_g = jnp.take(emb, jnp.asarray(a_idx), axis=0)
    p_g = jnp.take(emb, jnp.asarray(p_idx), axis=0)
    n_g = jnp.take(emb, jnp.asarray(n_idx), axis=0)
    m_g = jnp.asarray(msk)

    cost = pl.CostEstimate(
        flops=10 * k_pad * D + 12 * k_pad,      # 5 length-D mul-add reductions + epilogue
        transcendentals=2 * k_pad,              # 2 rsqrt per triplet
        bytes_accessed=(3 * k_pad * D + 2 * k_pad) * 4 + 4,
    )

    out = pl.pallas_call(
        _reid_loss_kernel,
        out_shape=jax.ShapeDtypeStruct((1, 1), jnp.float32),
        grid_spec=pltpu.PrefetchScalarGridSpec(
            num_scalar_prefetch=0,
            grid=(k_pad // tile_k,),
            in_specs=[
                pl.BlockSpec((tile_k, D), lambda i: (i, 0)),   # anchors
                pl.BlockSpec((tile_k, D), lambda i: (i, 0)),   # positives
                pl.BlockSpec((tile_k, D), lambda i: (i, 0)),   # negatives
                pl.BlockSpec((tile_k, 2), lambda i: (i, 0)),   # masks
            ],
            out_specs=pl.BlockSpec((1, 1), lambda i: (0, 0)),
            scratch_shapes=[pltpu.VMEM((tile_k, 1), jnp.float32)],
        ),
        compiler_params=pltpu.CompilerParams(
            dimension_semantics=("arbitrary",)),
        cost_estimate=cost,
    )(a_g, p_g, n_g, m_g)

    # Divide by c == number of unique non-(-1) ids.
    return out[0, 0] / jnp.float32(K)


def reid_loss_ref(ids_x, embeddings):
    """Pure-numpy reference of the same (deterministic-selection) math."""
    emb = np.asarray(embeddings, np.float64)
    built = build_triplet_indices(ids_x)
    if built is None:
        return 0.0
    a_idx, p_idx, n_idx, msk = built
    K = a_idx.shape[0]

    def cos(x, y):
        return float(np.dot(x, y) /
                     max(np.linalg.norm(x) * np.linalg.norm(y), _EPS))

    total = 0.0
    for i in range(K):
        a = emb[a_idx[i]]
        p = emb[p_idx[i]]
        n = emb[n_idx[i]]
        if msk[i, 0]:
            total += max(1.0 - cos(a, p), 0.0)
        if msk[i, 1]:
            total += max(2.0 - (1.0 - cos(a, n)), 0.0)
    return total / K


if __name__ == "__main__":
    key = jax.random.PRNGKey(0)
    N, D = 8, 32
    embeddings = jax.random.normal(key, (N, D), dtype=jnp.float32)
    # ids per embedding; -1 means "ignore"
    ids_x = np.array([0, 1, 0, 2, 1, -1, 2, 0], dtype=np.int32)

    loss = reid_loss_pallas(ids_x, embeddings)
    loss = jax.block_until_ready(loss)

    ref = reid_loss_ref(ids_x, np.asarray(embeddings))
    assert abs(float(loss) - ref) < 1e-3 * max(1.0, abs(ref)), (float(loss), ref)
    print("KERNEL_OK")
</pallas_src>

<mosaic_0001>
module attributes {stable_mosaic.version = 11 : i64} {
  func.func @_reid_loss_kernel(%arg0: i32, %arg1: memref<8x32xf32, #tpu.memory_space<vmem>>, %arg2: memref<8x32xf32, #tpu.memory_space<vmem>>, %arg3: memref<8x32xf32, #tpu.memory_space<vmem>>, %arg4: memref<8x2xf32, #tpu.memory_space<vmem>>, %arg5: memref<1x1xf32, #tpu.memory_space<vmem>>, %arg6: memref<8x1xf32, #tpu.memory_space<vmem>>) attributes {dimension_semantics = [#tpu.dimension_semantics<arbitrary>], iteration_bounds = array<i64: 1>, scalar_prefetch = 0 : i64, scratch_operands = 1 : i64, tpu.core_type = #tpu.core_type<tc>, window_params = [{transform_indices = @transform_0, window_bounds = array<i64: 8, 32>}, {transform_indices = @transform_1, window_bounds = array<i64: 8, 32>}, {transform_indices = @transform_2, window_bounds = array<i64: 8, 32>}, {transform_indices = @transform_3, window_bounds = array<i64: 8, 2>}, {pipeline_mode = #tpu.pipeline_mode<synchronous>, transform_indices = @transform_4, window_bounds = array<i64: 1, 1>}]} {
    %c0_i32 = arith.constant 0 : i32
    %0 = arith.cmpi eq, %arg0, %c0_i32 : i32
    %1 = arith.extui %0 : i1 to i32
    %c0_i32_0 = arith.constant 0 : i32
    %2 = arith.cmpi ne, %1, %c0_i32_0 : i32
    scf.if %2 {
      %cst_25 = arith.constant 0.000000e+00 : f32
      %53 = vector.broadcast %cst_25 : f32 to vector<8x1xf32>
      %c0_26 = arith.constant 0 : index
      %c0_27 = arith.constant 0 : index
      %54 = vector.load %arg6[%c0_26, %c0_27] : memref<8x1xf32, #tpu.memory_space<vmem>>, vector<8x1xf32>
      tpu.vector_store %arg6[%c0_26, %c0_27], %53 {strides = array<i32>} : memref<8x1xf32, #tpu.memory_space<vmem>>, vector<8x1xf32>,
    } else {
    }
    %c0 = arith.constant 0 : index
    %c0_1 = arith.constant 0 : index
    %3 = vector.load %arg1[%c0, %c0_1] : memref<8x32xf32, #tpu.memory_space<vmem>>, vector<8x32xf32>
    %c0_2 = arith.constant 0 : index
    %c0_3 = arith.constant 0 : index
    %4 = vector.load %arg2[%c0_2, %c0_3] : memref<8x32xf32, #tpu.memory_space<vmem>>, vector<8x32xf32>
    %c0_4 = arith.constant 0 : index
    %c0_5 = arith.constant 0 : index
    %5 = vector.load %arg3[%c0_4, %c0_5] : memref<8x32xf32, #tpu.memory_space<vmem>>, vector<8x32xf32>
    %c0_6 = arith.constant 0 : index
    %c0_7 = arith.constant 0 : index
    %6 = vector.load %arg4[%c0_6, %c0_7] : memref<8x2xf32, #tpu.memory_space<vmem>>, vector<8x2xf32>
    %7 = arith.mulf %3, %3 : vector<8x32xf32>
    %cst = arith.constant dense<0.000000e+00> : vector<8xf32>
    %8 = vector.multi_reduction <add>, %7, %cst [1] : vector<8x32xf32> to vector<8xf32>
    %9 = vector.shape_cast %8 : vector<8xf32> to vector<8x1xf32>
    %10 = arith.mulf %4, %4 : vector<8x32xf32>
    %cst_8 = arith.constant dense<0.000000e+00> : vector<8xf32>
    %11 = vector.multi_reduction <add>, %10, %cst_8 [1] : vector<8x32xf32> to vector<8xf32>
    %12 = vector.shape_cast %11 : vector<8xf32> to vector<8x1xf32>
    %13 = arith.mulf %5, %5 : vector<8x32xf32>
    %cst_9 = arith.constant dense<0.000000e+00> : vector<8xf32>
    %14 = vector.multi_reduction <add>, %13, %cst_9 [1] : vector<8x32xf32> to vector<8xf32>
    %15 = vector.shape_cast %14 : vector<8xf32> to vector<8x1xf32>
    %16 = arith.mulf %3, %4 : vector<8x32xf32>
    %cst_10 = arith.constant dense<0.000000e+00> : vector<8xf32>
    %17 = vector.multi_reduction <add>, %16, %cst_10 [1] : vector<8x32xf32> to vector<8xf32>
    %18 = vector.shape_cast %17 : vector<8xf32> to vector<8x1xf32>
    %19 = arith.mulf %3, %5 : vector<8x32xf32>
    %cst_11 = arith.constant dense<0.000000e+00> : vector<8xf32>
    %20 = vector.multi_reduction <add>, %19, %cst_11 [1] : vector<8x32xf32> to vector<8xf32>
    %21 = vector.shape_cast %20 : vector<8xf32> to vector<8x1xf32>
    %22 = arith.mulf %9, %12 : vector<8x1xf32>
    %cst_12 = arith.constant 9.99999996E-13 : f32
    %23 = vector.broadcast %cst_12 : f32 to vector<8x1xf32>
    %24 = arith.maximumf %22, %23 : vector<8x1xf32>
    %25 = math.rsqrt %24 : vector<8x1xf32>
    %26 = arith.mulf %18, %25 : vector<8x1xf32>
    %27 = arith.mulf %9, %15 : vector<8x1xf32>
    %cst_13 = arith.constant 9.99999996E-13 : f32
    %28 = vector.broadcast %cst_13 : f32 to vector<8x1xf32>
    %29 = arith.maximumf %27, %28 : vector<8x1xf32>
    %30 = math.rsqrt %29 : vector<8x1xf32>
    %31 = arith.mulf %21, %30 : vector<8x1xf32>
    %cst_14 = arith.constant 1.000000e+00 : f32
    %32 = vector.broadcast %cst_14 : f32 to vector<8x1xf32>
    %33 = arith.subf %32, %26 : vector<8x1xf32>
    %cst_15 = arith.constant 0.000000e+00 : f32
    %34 = vector.broadcast %cst_15 : f32 to vector<8x1xf32>
    %35 = arith.maximumf %33, %34 : vector<8x1xf32>
    %cst_16 = arith.constant 1.000000e+00 : f32
    %36 = vector.broadcast %cst_16 : f32 to vector<8x1xf32>
    %37 = arith.subf %36, %31 : vector<8x1xf32>
    %cst_17 = arith.constant 2.000000e+00 : f32
    %38 = vector.broadcast %cst_17 : f32 to vector<8x1xf32>
    %39 = arith.subf %38, %37 : vector<8x1xf32>
    %cst_18 = arith.constant 0.000000e+00 : f32
    %40 = vector.broadcast %cst_18 : f32 to vector<8x1xf32>
    %41 = arith.maximumf %39, %40 : vector<8x1xf32>
    %c0_19 = arith.constant 0 : index
    %c0_20 = arith.constant 0 : index
    %42 = vector.load %arg6[%c0_19, %c0_20] : memref<8x1xf32, #tpu.memory_space<vmem>>, vector<8x1xf32>
    %43 = vector.extract_strided_slice %6 {offsets = [0, 0], sizes = [8, 1], strides = [1, 1]} : vector<8x2xf32> to vector<8x1xf32>
    %44 = arith.mulf %35, %43 : vector<8x1xf32>
    %45 = vector.extract_strided_slice %6 {offsets = [0, 1], sizes = [8, 1], strides = [1, 1]} : vector<8x2xf32> to vector<8x1xf32>
    %46 = arith.mulf %41, %45 : vector<8x1xf32>
    %47 = arith.addf %44, %46 : vector<8x1xf32>
    %48 = arith.addf %42, %47 : vector<8x1xf32>
    %c0_21 = arith.constant 0 : index
    %c0_22 = arith.constant 0 : index
    %49 = vector.load %arg6[%c0_21, %c0_22] : memref<8x1xf32, #tpu.memory_space<vmem>>, vector<8x1xf32>
    tpu.vector_store %arg6[%c0_21, %c0_22], %48 {strides = array<i32>} : memref<8x1xf32, #tpu.memory_space<vmem>>, vector<8x1xf32>,
    %c0_i32_23 = arith.constant 0 : i32
    %50 = arith.cmpi eq, %arg0, %c0_i32_23 : i32
    %51 = arith.extui %50 : i1 to i32
    %c0_i32_24 = arith.constant 0 : i32
    %52 = arith.cmpi ne, %51, %c0_i32_24 : i32
    scf.if %52 {
      %c0_25 = arith.constant 0 : index
      %c0_26 = arith.constant 0 : index
      %53 = vector.load %arg6[%c0_25, %c0_26] : memref<8x1xf32, #tpu.memory_space<vmem>>, vector<8x1xf32>
      %54 = vector.shape_cast %53 : vector<8x1xf32> to vector<1x8x1xf32>
      %cst_27 = arith.constant dense<0.000000e+00> : vector<1xf32>
      %55 = vector.multi_reduction <add>, %54, %cst_27 [1, 2] : vector<1x8x1xf32> to vector<1xf32>
      %56 = vector.shape_cast %55 : vector<1xf32> to vector<1x1x1xf32>
      %57 = vector.extract %56[0, 0, 0] : f32 from vector<1x1x1xf32>
      %58 = vector.broadcast %57 : f32 to vector<1x1xf32>
      %c0_28 = arith.constant 0 : index
      %c0_29 = arith.constant 0 : index
      %59 = vector.load %arg5[%c0_28, %c0_29] : memref<1x1xf32, #tpu.memory_space<vmem>>, vector<1x1xf32>
      tpu.vector_store %arg5[%c0_28, %c0_29], %58 {strides = array<i32>} : memref<1x1xf32, #tpu.memory_space<vmem>>, vector<1x1xf32>,
    } else {
    }
    return
  }
  func.func @transform_0(%arg0: i32) -> (i32, i32) {
    %c0_i32 = arith.constant 0 : i32
    %c0_i32_0 = arith.constant 0 : i32
    return %arg0, %c0_i32 : i32, i32
  }
  func.func @transform_1(%arg0: i32) -> (i32, i32) {
    %c0_i32 = arith.constant 0 : i32
    %c0_i32_0 = arith.constant 0 : i32
    return %arg0, %c0_i32 : i32, i32
  }
  func.func @transform_2(%arg0: i32) -> (i32, i32) {
    %c0_i32 = arith.constant 0 : i32
    %c0_i32_0 = arith.constant 0 : i32
    return %arg0, %c0_i32 : i32, i32
  }
  func.func @transform_3(%arg0: i32) -> (i32, i32) {
    %c0_i32 = arith.constant 0 : i32
    %c0_i32_0 = arith.constant 0 : i32
    return %arg0, %c0_i32 : i32, i32
  }
  func.func @transform_4(%arg0: i32) -> (i32, i32) {
    %c0_i32 = arith.constant 0 : i32
    %c0_i32_0 = arith.constant 0 : i32
    %c0_i32_1 = arith.constant 0 : i32
    return %c0_i32, %c0_i32_0 : i32, i32
  }
}

</mosaic_0001>

<bundles_post_ra>
// kernel: tpu_custom_call.1
= control target key start
LH: loop header
LB: loop body
LE: loop exit
PB: predicated region body
PF: predicated region fallthrough
CT: control target
= control target key end

     0   :  { %9 = vsyncpa [#allocation4], 0  ;;  %s240_s0 = inlined_call_operand.vmem [shape: f32[8,32], index: 0, kind: input, shape index: {}]   ;;  %s241_s1 = inlined_call_operand.hbm [shape: f32[8,32], index: 1, kind: input, shape index: {}]   ;;  %s242_s2 = inlined_call_operand.vmem [shape: f32[8,32], index: 2, kind: input, shape index: {}]   ;;  %s243_s3 = inlined_call_operand.vmem [shape: f32[8,2], index: 3, kind: input, shape index: {}]   ;;  %s244_s4 = inlined_call_operand.hbm [shape: f32[1,1], index: 4, kind: output, shape index: {}]  }
   0x1   :  { %10 = vsyncpa [#allocation5], 0  ;;  %s175_s15 = smov [#allocation3]   ;;  %s127_s19 = scalar_lea.hbm %s241_s1, 128 }
   0x2   :  { %s19_s16 = sshll.u32 %s175_s15, 4  ;;  %p128_p0 = scmp.ne.s32.totalorder %s241_s1, %s127_s19  ;;  %s20_s16 = int_to_ptr.vmem [resolvable:$true] %s19_s16 }
   0x3   :  { %p131_p1 = scmp.lt.u32.totalorder %s127_s19, %s241_s1 }
   0x5   :  { %p133_p2 = pnand %p131_p1, %p128_p0 }
   0x7   :  { %136 = shalt.err (!%p133_p2)
}
   0x8   :  { %s137_s24 = scalar_lea.vmem %s20_s16, 128  ;;  %p142_p4 = scmp.lt.s32.totalorder %s20_s16, %s20_s16 }
   0x9   :  { %p138_p3 = scmp.ne.s32.totalorder %s20_s16, %s137_s24  ;;  %p143_p5 = scmp.lt.s32.totalorder %s137_s24, %s137_s24 }
   0xb   :  { %p144_p6 = por %p143_p5, %p142_p4 }
   0xd   :  { %p145_p7 = pnand %p144_p6, %p138_p3 }
   0xf   :  { %148 = shalt.err (!%p145_p7)
}
  0x10   :  { %22 = dma.hbm_to_vmem [thread:$0]  %s241_s1, 128, %s20_s16, [#allocation4]  }
  0x11   :  { %171 = dma.done.wait [#allocation4], 128  }
  0x12   :  { %172 = vsyncadd [#allocation4], 4294967168  ;;  %v36_v0 = vld [vmem:[%s240_s0] sm:$0xff]  ;;  %vm41_vm0 = vcmask 261120   ;;  %v37_v2 = vld [vmem:[#allocation3] sm:$0xff]  ;;  %vm34_vm1 = vcmask 7168  }
  0x13   :  { %v38_v1 = vld [vmem:[%s242_s2] sm:$0xff]  ;;  %v40_v4 = vmul.f32 %v36_v0, %v36_v0  ;;  %v45_v5 = vmul.f32 %v37_v2, %v37_v2  ;;  %v53_v11 = vmul.f32 %v37_v2, %v36_v0  ;;  %v176_v13 = vmov 0.0   ;;  %s177_s2 = smov 127  }
  0x14   :  { %v57_v3 = vmul.f32 %v38_v1, %v36_v0  ;;  %v49_v6 = vmul.f32 %v38_v1, %v38_v1  ;;  %35 = vst.msk [vmem:[#allocation2] sm:$0xff] %vm34_vm1, %v176_v13  ;;  %v39_v28 = vld [vmem:[%s243_s3] sm:$0xff]  ;;  %s178_s3 = smov [#allocation6]   ;;  %vm100_vm2 = vcmask 0  }
  0x15   :  { %v42_v8 = vsel %vm41_vm0, %v40_v4, 0.0  ;;  %v46_v9 = vsel %vm41_vm0, %v45_v5, 0.0  ;;  %v54_v12 = vsel %vm41_vm0, %v53_v11, 0.0  ;;  %s108_s5 = sshll.u32 %s178_s3, 4  ;;  %s109_s5 = int_to_ptr.vmem [resolvable:$true] %s108_s5 }
  0x16   :  { %v58_v7 = vsel %vm41_vm0, %v57_v3, 0.0  ;;  %43 = vadd.xlane.f32.xlu0 %v42_v8  ;;  %v50_v10 = vsel %vm41_vm0, %v49_v6, 0.0  ;;  %s149_s7 = scalar_lea.vmem %s109_s5, 16  ;;  %s153_s8 = scalar_lea.vmem %s109_s5, 32 }
  0x17   :  { %59 = vadd.xlane.f32.xlu1 %v58_v7  ;;  %p150_p8 = scmp.ne.s32.totalorder %s109_s5, %s149_s7  ;;  %p154_p9 = scmp.lt.s32.totalorder %s109_s5, %s109_s5 }
  0x18   :  { %p155_p10 = scmp.lt.s32.totalorder %s153_s8, %s149_s7 }
  0x1a   :  { %51 = vadd.xlane.f32.xlu0 %v50_v10  ;;  %p156_p11 = por %p155_p10, %p154_p9 }
  0x1b   :  { %47 = vadd.xlane.f32.xlu1 %v46_v9  ;;  %v74_v36 = vld [vmem:[#allocation2] sm:$0xff] }
  0x1c   :  { %p157_p12 = pnand %p156_p11, %p150_p8 }
  0x1e   :  { %55 = vadd.xlane.f32.xlu0 %v54_v12 }
  0xa3   :  { %v44_v15 = vpop.xlane.xlu0 %43 }
  0xa4   :  { %v60_v14 = vpop.xlane.xlu1 %59 }
  0xa7   :  { %v52_v17 = vpop.xlane.xlu0 %51 }
  0xa8   :  { %v48_v16 = vpop.xlane.xlu1 %47  ;;  %v65_v19 = vmul.f32 %v52_v17, %v44_v15 }
  0xa9   :  { %v61_v18 = vmul.f32 %v48_v16, %v44_v15 }
  0xaa   :  { %v66_v21 = vmax.f32 %v65_v19, 1e-12 }
  0xab   :  { %v62_v20 = vmax.f32 %v61_v18, 1e-12  ;;  %v56_v22 = vpop.xlane.xlu0 %55 }
  0xad   :  { %123 = vrsqrt.f32 %v62_v20 }
  0xae   :  { %125 = vrsqrt.f32 %v66_v21 }
  0xb7   :  { %v124_v23 = vpop.eup %123 }
  0xb8   :  { %v126_v24 = vpop.eup %125  ;;  %v64_v25 = vmul.f32 %v124_v23, %v56_v22 }
  0xb9   :  { %v68_v26 = vmul.f32 %v126_v24, %v60_v14 }
  0xba   :  { %v69_v27 = vsub.f32 1.0, %v64_v25 }
  0xbb   :  { %v71_v29 = vsub.f32 1.0, %v68_v26 }
  0xbc   :  { %v70_v30 = vmax.f32 %v69_v27, 0.0 }
  0xbd   :  { %v72_v31 = vsub.f32 2.0, %v71_v29 }
  0xbe   :  { %v75_v32 = vmul.f32 %v70_v30, %v39_v28 }
  0xbf   :  { %v73_v33 = vmax.f32 %v72_v31, 0.0 }
  0xc1   :  { %v76_v34 = vmul.f32 %v73_v33, %v39_v28 }
  0xc3   :  { %78 = vrot.lane.b32.xlu1 %v76_v34, %s177_s2 }
 0x135   :  { %v79_v35 = vpop.permute.xlu1 %78 }
 0x136   :  { %v81_v37 = vadd.f32 %v79_v35, %v75_v32 }
 0x138   :  { %v82_v38 = vadd.f32 %v81_v37, %v74_v36 }
 0x13a   :  { %84 = vst.msk [vmem:[#allocation2] sm:$0xff] %vm34_vm1, %v82_v38 }
 0x141   :  { %v88_v39 = vld [vmem:[#allocation2] sm:$0xff] }
 0x142   :  { %v89_v40 = vsel %vm34_vm1, %v88_v39, 0.0 }
 0x143   :  { %90 = vadd.xlane.f32.xlu0 %v89_v40 }
 0x1d0   :  { %v91_v41 = vpop.xlane.xlu0 %90 }
 0x1d1   :  { %v92_v42 = vrot.slane %v91_v41, 4 }
 0x1d3   :  { %v93_v43 = vadd.f32 %v92_v42, %v91_v41 }
 0x1d5   :  { %v94_v44 = vrot.slane %v93_v43, 2 }
 0x1d7   :  { %v95_v45 = vadd.f32 %v94_v44, %v93_v43 }
 0x1d9   :  { %v96_v46 = vrot.slane %v95_v45, 1 }
 0x1db   :  { %v97_v47 = vadd.f32 %v96_v46, %v95_v45 }
 0x1dd   :  { %117 = vpush %v97_v47 }
 0x20e   :  { %s118_s6 = spop %117 }
 0x20f   :  { %v99_v48 = vstv %s118_s6 }
 0x210   :  { %101 = vst.msk [vmem:[#allocation6] sm:$0x1] %vm100_vm2, %v99_v48 }
 0x211   :  { %160 = shalt.err (!%p157_p12)
}
 0x212   :  { %s161_s11 = scalar_lea.hbm %s244_s4, 16 }
 0x213   :  { %p162_p13 = scmp.ne.s32.totalorder %s244_s4, %s161_s11  ;;  %p165_p0 = scmp.lt.u32.totalorder %s161_s11, %s244_s4 }
 0x215   :  { %p167_p1 = pnand %p165_p0, %p162_p13 }
 0x217   :  { %170 = shalt.err (!%p167_p1)
}
 0x218   :  { %111 = dma.vmem_to_hbm [thread:$0]  %s109_s5, 16, %s244_s4, [#allocation5]  }
 0x219   :  { %173 = dma.done.wait [#allocation5], 16  }
 0x21a   :  { %174 = vsyncadd [#allocation5], 4294967280 }
 0x21b   :  { %115 = vsyncpa [#allocation4], 1 }
 0x21c   :  { %116 = vsyncpa [#allocation5], 1 }

</bundles_post_ra>
